<compile_context>
chip_gen: v7x
topology: tpu7x:2x2x1
jax: 0.10.0
libtpu: 0.0.40
codegen_flags: <defaults>
</compile_context>

<pallas_src>
import functools

import jax
import jax.numpy as jnp
from jax import lax
from jax.experimental import pallas as pl
from jax.experimental.pallas import tpu as pltpu

P_DROP = 0.1
KEEP_SCALE = 1.0 / (1.0 - P_DROP)
DROP_THRESHOLD = int(round(P_DROP * (1 << 32)))   # uint32 bits < T  ->  drop
LRELU_SLOPE = 0.2
BN_EPS = 1e-5


def _conv_block_kernel(x_ref, bits_ref, wf_ref, bf_ref,
                       z_ref, sum_ref, sq_ref, *, dilation):
    """One batch element per grid step: dropout -> fused (dilated + 1x1) conv
    -> residual -> leaky_relu, plus per-channel sum / sum-of-squares
    accumulation for the BatchNorm batch statistics."""
    n = pl.program_id(0)
    _, C, L = x_ref.shape
    d = dilation

    # ---- dropout (p=0.1, training) directly on the precomputed uint32 bits ----
    # TODO(synk): RNG stream differs from torch's; Bernoulli(0.9) keep + 1/0.9
    # scaling semantics are identical.
    bits = bits_ref[0]                                       # (C, L) uint32
    keep_scale = jnp.where(bits >= jnp.uint32(DROP_THRESHOLD),
                           jnp.float32(KEEP_SCALE), jnp.float32(0.0))
    x = x_ref[0] * keep_scale                                # (C, L) f32

    # ---- three dilation-shifted taps stacked on the contraction axis ----
    zpad = jnp.zeros((C, d), jnp.float32)
    x_m = jnp.concatenate([zpad, x[:, :L - d]], axis=1)      # tap 0: x[t - d]
    x_p = jnp.concatenate([x[:, d:], zpad], axis=1)          # tap 2: x[t + d]
    xs = jnp.concatenate([x_m, x, x_p], axis=0)              # (3C, L)

    # ---- fused (1x1 ∘ dilated) conv: single MXU matmul, K = 3C, bf16 in / f32 acc ----
    z = jnp.dot(wf_ref[...], xs.astype(wf_ref.dtype),
                preferred_element_type=jnp.float32)          # (C, L) f32
    z = z + bf_ref[...] + x                                  # fused bias + residual
    z = jnp.where(z >= 0.0, z, LRELU_SLOPE * z)              # leaky_relu(0.2)
    z_ref[0] = z

    # ---- BatchNorm statistics accumulated across the (arbitrary) batch axis ----
    @pl.when(n == 0)
    def _():
        sum_ref[...] = jnp.zeros_like(sum_ref)
        sq_ref[...] = jnp.zeros_like(sq_ref)

    sum_ref[...] += jnp.sum(z, axis=1, keepdims=True)        # (C, 1)
    sq_ref[...] += jnp.sum(z * z, axis=1, keepdims=True)     # (C, 1)


def _bn_apply_kernel(z_ref, scale_ref, shift_ref, o_ref):
    # Affine-folded BatchNorm: out = gamma * (z - mean) * rsqrt(var+eps) + beta
    o_ref[...] = z_ref[...] * scale_ref[...] + shift_ref[...]


def _pick_l_tile(L):
    for t in (8192, 4096, 2048, 1024, 512, 256, 128):
        if L % t == 0:
            return t
    return L


def dilated_block(x, wdil, bdil, wpt, bpt, gamma, beta, *, dilation, seed=0):
    N, C, L = x.shape
    x = x.astype(jnp.float32)

    # ---- weight plumbing (glue): fuse the 1x1 conv into the dilated conv ----
    wpt2d = wpt[:, :, 0].astype(jnp.float32)                           # (C, C)
    wf = jnp.concatenate(
        [wpt2d @ wdil[:, :, k].astype(jnp.float32) for k in range(3)],
        axis=1)                                                        # (C, 3C)
    wf = wf.astype(jnp.bfloat16)       # MXU operands in bf16, accumulate in f32
    bf = (wpt2d @ bdil.reshape(C, 1).astype(jnp.float32)
          + bpt.reshape(C, 1).astype(jnp.float32))                     # (C, 1)

    # Dropout bits (uint32); keep decision happens in-kernel on the raw bits.
    bits = jax.random.bits(jax.random.PRNGKey(seed), (N, C, L), dtype=jnp.uint32)

    # ---- pass 1: conv block + BN statistics, gridded over the batch axis ----
    # TODO(synk): tiling L as well would need +/-dilation halos per tile; the
    # batch-axis grid already gives double-buffered DMA pipelining here.
    kernel = functools.partial(_conv_block_kernel, dilation=dilation)
    z, zsum, zsq = pl.pallas_call(
        kernel,
        grid=(N,),
        in_specs=[
            pl.BlockSpec((1, C, L), lambda n: (n, 0, 0)),    # x
            pl.BlockSpec((1, C, L), lambda n: (n, 0, 0)),    # dropout bits
            pl.BlockSpec((C, 3 * C), lambda n: (0, 0)),      # fused conv weight
            pl.BlockSpec((C, 1), lambda n: (0, 0)),          # fused bias
        ],
        out_specs=(
            pl.BlockSpec((1, C, L), lambda n: (n, 0, 0)),    # pre-BN activations
            pl.BlockSpec((C, 1), lambda n: (0, 0)),          # per-channel sum
            pl.BlockSpec((C, 1), lambda n: (0, 0)),          # per-channel sumsq
        ),
        out_shape=(
            jax.ShapeDtypeStruct((N, C, L), jnp.float32),
            jax.ShapeDtypeStruct((C, 1), jnp.float32),
            jax.ShapeDtypeStruct((C, 1), jnp.float32),
        ),
        compiler_params=pltpu.CompilerParams(
            dimension_semantics=("arbitrary",),    # BN stats accumulate over N
            vmem_limit_bytes=32 * 1024 * 1024),    # safe on v7x's 64 MiB VMEM
    )(x, bits, wf, bf)

    # ---- BN batch statistics -> folded scale/shift (parameter-sized glue) ----
    cnt = jnp.float32(N * L)
    mean = zsum / cnt                                                  # (C, 1)
    var = jnp.maximum(zsq / cnt - mean * mean, 0.0)                    # biased
    inv = lax.rsqrt(var + BN_EPS)
    scale = gamma.reshape(C, 1).astype(jnp.float32) * inv
    shift = beta.reshape(C, 1).astype(jnp.float32) - mean * scale
    # TODO(synk): running_mean / running_var (momentum 0.1) are not produced.

    # ---- pass 2: apply BN, fully parallel grid over (N, L tiles) ----
    tl = _pick_l_tile(L)
    out = pl.pallas_call(
        _bn_apply_kernel,
        grid=(N, L // tl),
        in_specs=[
            pl.BlockSpec((1, C, tl), lambda n, l: (n, 0, l)),
            pl.BlockSpec((C, 1), lambda n, l: (0, 0)),
            pl.BlockSpec((C, 1), lambda n, l: (0, 0)),
        ],
        out_specs=pl.BlockSpec((1, C, tl), lambda n, l: (n, 0, l)),
        out_shape=jax.ShapeDtypeStruct((N, C, L), jnp.float32),
        compiler_params=pltpu.CompilerParams(
            dimension_semantics=("parallel", "parallel"),   # 2x TC on v7x
            vmem_limit_bytes=32 * 1024 * 1024),
    )(z, scale, shift)
    return out


def init_params(key, channels):
    # Deterministic, PyTorch-Conv1d-style uniform init (fresh module, no checkpoint).
    k1, k2, k3, k4 = jax.random.split(key, 4)
    bound_d = 1.0 / jnp.sqrt(channels * 3.0)
    wdil = jax.random.uniform(k1, (channels, channels, 3), jnp.float32,
                              -bound_d, bound_d)
    bdil = jax.random.uniform(k2, (channels,), jnp.float32, -bound_d, bound_d)
    bound_p = 1.0 / jnp.sqrt(float(channels))
    wpt = jax.random.uniform(k3, (channels, channels, 1), jnp.float32,
                             -bound_p, bound_p)
    bpt = jax.random.uniform(k4, (channels,), jnp.float32, -bound_p, bound_p)
    gamma = jnp.ones((channels,), jnp.float32)   # BatchNorm1d fresh weight
    beta = jnp.zeros((channels,), jnp.float32)   # BatchNorm1d fresh bias
    return wdil, bdil, wpt, bpt, gamma, beta


if __name__ == "__main__":
    N, C, L, dilation = 2, 8, 128, 2
    key = jax.random.PRNGKey(0)
    kx, kp = jax.random.split(key)
    x = jax.random.normal(kx, (N, C, L), jnp.float32)
    wdil, bdil, wpt, bpt, gamma, beta = init_params(kp, C)

    out = dilated_block(x, wdil, bdil, wpt, bpt, gamma, beta,
                        dilation=dilation, seed=0)
    out = jax.block_until_ready(out)
    assert out.shape == (N, C, L) and out.dtype == jnp.float32
    assert bool(jnp.all(jnp.isfinite(out)))
    print("KERNEL_OK")
</pallas_src>

<mosaic_0001>
module attributes {stable_mosaic.version = 11 : i64} {
  func.func @_conv_block_kernel(%arg0: i32, %arg1: memref<1x8x128xf32, #tpu.memory_space<vmem>>, %arg2: memref<1x8x128xi32, #tpu.memory_space<vmem>>, %arg3: memref<8x24xbf16, #tpu.memory_space<vmem>>, %arg4: memref<8x1xf32, #tpu.memory_space<vmem>>, %arg5: memref<1x8x128xf32, #tpu.memory_space<vmem>>, %arg6: memref<8x1xf32, #tpu.memory_space<vmem>>, %arg7: memref<8x1xf32, #tpu.memory_space<vmem>>) attributes {dimension_semantics = [#tpu.dimension_semantics<arbitrary>], iteration_bounds = array<i64: 2>, scalar_prefetch = 0 : i64, scratch_operands = 0 : i64, tpu.core_type = #tpu.core_type<tc>, window_params = [{transform_indices = @transform_0, window_bounds = array<i64: 1, 8, 128>}, {transform_indices = @transform_1, window_bounds = array<i64: 1, 8, 128>}, {pipeline_mode = #tpu.pipeline_mode<synchronous>, transform_indices = @transform_2, window_bounds = array<i64: 8, 24>}, {pipeline_mode = #tpu.pipeline_mode<synchronous>, transform_indices = @transform_3, window_bounds = array<i64: 8, 1>}, {transform_indices = @transform_4, window_bounds = array<i64: 1, 8, 128>}, {pipeline_mode = #tpu.pipeline_mode<synchronous>, transform_indices = @transform_5, window_bounds = array<i64: 8, 1>}, {pipeline_mode = #tpu.pipeline_mode<synchronous>, transform_indices = @transform_6, window_bounds = array<i64: 8, 1>}]} {
    %c0 = arith.constant 0 : index
    %c0_0 = arith.constant 0 : index
    %c0_1 = arith.constant 0 : index
    %0 = vector.load %arg2[%c0, %c0_0, %c0_1] : memref<1x8x128xi32, #tpu.memory_space<vmem>>, vector<1x8x128xi32>
    %1 = vector.shape_cast %0 : vector<1x8x128xi32> to vector<8x128xi32>
    %c429496730_i32 = arith.constant 429496730 : i32
    %2 = vector.broadcast %c429496730_i32 : i32 to vector<8x128xi32>
    %3 = arith.cmpi uge, %1, %2 : vector<8x128xi32>
    %cst = arith.constant 1.11111116 : f32
    %cst_2 = arith.constant 0.000000e+00 : f32
    %4 = vector.broadcast %cst : f32 to vector<8x128xf32>
    %5 = vector.broadcast %cst_2 : f32 to vector<8x128xf32>
    %6 = arith.select %3, %4, %5 : vector<8x128xi1>, vector<8x128xf32>
    %c0_3 = arith.constant 0 : index
    %c0_4 = arith.constant 0 : index
    %c0_5 = arith.constant 0 : index
    %7 = vector.load %arg1[%c0_3, %c0_4, %c0_5] : memref<1x8x128xf32, #tpu.memory_space<vmem>>, vector<1x8x128xf32>
    %8 = vector.shape_cast %7 : vector<1x8x128xf32> to vector<8x128xf32>
    %9 = arith.mulf %8, %6 : vector<8x128xf32>
    %cst_6 = arith.constant 0.000000e+00 : f32
    %10 = vector.broadcast %cst_6 : f32 to vector<8x2xf32>
    %11 = vector.extract_strided_slice %9 {offsets = [0, 0], sizes = [8, 126], strides = [1, 1]} : vector<8x128xf32> to vector<8x126xf32>
    %12 = tpu.concatenate %10, %11 in 1 : vector<8x2xf32>, vector<8x126xf32> -> vector<8x128xf32>
    %13 = vector.extract_strided_slice %9 {offsets = [0, 2], sizes = [8, 126], strides = [1, 1]} : vector<8x128xf32> to vector<8x126xf32>
    %14 = tpu.concatenate %13, %10 in 1 : vector<8x126xf32>, vector<8x2xf32> -> vector<8x128xf32>
    %15 = tpu.concatenate %12, %9, %14 in 0 : vector<8x128xf32>, vector<8x128xf32>, vector<8x128xf32> -> vector<24x128xf32>
    %c0_7 = arith.constant 0 : index
    %c0_8 = arith.constant 0 : index
    %16 = vector.load %arg3[%c0_7, %c0_8] : memref<8x24xbf16, #tpu.memory_space<vmem>>, vector<8x24xbf16>
    %17 = arith.truncf %15 : vector<24x128xf32> to vector<24x128xbf16>
    %cst_9 = arith.constant dense<0.000000e+00> : vector<8x128xf32>
    %18 = tpu.matmul %16, %17, %cst_9 {dimension_numbers = #tpu.dot_dimension_numbers<[1], [0], [0], [1], [0, 0, 1, 1], [], []>} : vector<8x24xbf16>, vector<24x128xbf16>, vector<8x128xf32> -> vector<8x128xf32>
    %c0_10 = arith.constant 0 : index
    %c0_11 = arith.constant 0 : index
    %19 = vector.load %arg4[%c0_10, %c0_11] : memref<8x1xf32, #tpu.memory_space<vmem>>, vector<8x1xf32>
    %20 = vector.broadcast %19 : vector<8x1xf32> to vector<8x128xf32>
    %21 = arith.addf %18, %20 : vector<8x128xf32>
    %22 = arith.addf %21, %9 : vector<8x128xf32>
    %cst_12 = arith.constant 0.000000e+00 : f32
    %23 = vector.broadcast %cst_12 : f32 to vector<8x128xf32>
    %24 = arith.cmpf oge, %22, %23 : vector<8x128xf32>
    %cst_13 = arith.constant 2.000000e-01 : f32
    %25 = vector.broadcast %cst_13 : f32 to vector<8x128xf32>
    %26 = arith.mulf %25, %22 : vector<8x128xf32>
    %27 = arith.select %24, %22, %26 : vector<8x128xi1>, vector<8x128xf32>
    %c0_14 = arith.constant 0 : index
    %c0_15 = arith.constant 0 : index
    %c0_16 = arith.constant 0 : index
    %28 = vector.load %arg5[%c0_14, %c0_15, %c0_16] : memref<1x8x128xf32, #tpu.memory_space<vmem>>, vector<1x8x128xf32>
    %29 = vector.shape_cast %28 : vector<1x8x128xf32> to vector<8x128xf32>
    %30 = vector.shape_cast %27 : vector<8x128xf32> to vector<1x8x128xf32>
    tpu.vector_store %arg5[%c0_14, %c0_15, %c0_16], %30 {strides = array<i32>} : memref<1x8x128xf32, #tpu.memory_space<vmem>>, vector<1x8x128xf32>,
    %c0_i32 = arith.constant 0 : i32
    %31 = arith.cmpi eq, %arg0, %c0_i32 : i32
    %32 = arith.extui %31 : i1 to i32
    %c0_i32_17 = arith.constant 0 : i32
    %33 = arith.cmpi ne, %32, %c0_i32_17 : i32
    scf.if %33 {
      %cst_28 = arith.constant 0.000000e+00 : f32
      %45 = vector.broadcast %cst_28 : f32 to vector<8x1xf32>
      %c0_29 = arith.constant 0 : index
      %c0_30 = arith.constant 0 : index
      %46 = vector.load %arg6[%c0_29, %c0_30] : memref<8x1xf32, #tpu.memory_space<vmem>>, vector<8x1xf32>
      tpu.vector_store %arg6[%c0_29, %c0_30], %45 {strides = array<i32>} : memref<8x1xf32, #tpu.memory_space<vmem>>, vector<8x1xf32>,
      %cst_31 = arith.constant 0.000000e+00 : f32
      %47 = vector.broadcast %cst_31 : f32 to vector<8x1xf32>
      %c0_32 = arith.constant 0 : index
      %c0_33 = arith.constant 0 : index
      %48 = vector.load %arg7[%c0_32, %c0_33] : memref<8x1xf32, #tpu.memory_space<vmem>>, vector<8x1xf32>
      tpu.vector_store %arg7[%c0_32, %c0_33], %47 {strides = array<i32>} : memref<8x1xf32, #tpu.memory_space<vmem>>, vector<8x1xf32>,
    } else {
    }
    %c0_18 = arith.constant 0 : index
    %c0_19 = arith.constant 0 : index
    %34 = vector.load %arg6[%c0_18, %c0_19] : memref<8x1xf32, #tpu.memory_space<vmem>>, vector<8x1xf32>
    %cst_20 = arith.constant dense<0.000000e+00> : vector<8xf32>
    %35 = vector.multi_reduction <add>, %27, %cst_20 [1] : vector<8x128xf32> to vector<8xf32>
    %36 = vector.shape_cast %35 : vector<8xf32> to vector<8x1xf32>
    %37 = arith.addf %34, %36 : vector<8x1xf32>
    %c0_21 = arith.constant 0 : index
    %c0_22 = arith.constant 0 : index
    %38 = vector.load %arg6[%c0_21, %c0_22] : memref<8x1xf32, #tpu.memory_space<vmem>>, vector<8x1xf32>
    tpu.vector_store %arg6[%c0_21, %c0_22], %37 {strides = array<i32>} : memref<8x1xf32, #tpu.memory_space<vmem>>, vector<8x1xf32>,
    %c0_23 = arith.constant 0 : index
    %c0_24 = arith.constant 0 : index
    %39 = vector.load %arg7[%c0_23, %c0_24] : memref<8x1xf32, #tpu.memory_space<vmem>>, vector<8x1xf32>
    %40 = arith.mulf %27, %27 : vector<8x128xf32>
    %cst_25 = arith.constant dense<0.000000e+00> : vector<8xf32>
    %41 = vector.multi_reduction <add>, %40, %cst_25 [1] : vector<8x128xf32> to vector<8xf32>
    %42 = vector.shape_cast %41 : vector<8xf32> to vector<8x1xf32>
    %43 = arith.addf %39, %42 : vector<8x1xf32>
    %c0_26 = arith.constant 0 : index
    %c0_27 = arith.constant 0 : index
    %44 = vector.load %arg7[%c0_26, %c0_27] : memref<8x1xf32, #tpu.memory_space<vmem>>, vector<8x1xf32>
    tpu.vector_store %arg7[%c0_26, %c0_27], %43 {strides = array<i32>} : memref<8x1xf32, #tpu.memory_space<vmem>>, vector<8x1xf32>,
    return
  }
  func.func @transform_0(%arg0: i32) -> (i32, i32, i32) {
    %c0_i32 = arith.constant 0 : i32
    %c0_i32_0 = arith.constant 0 : i32
    %c0_i32_1 = arith.constant 0 : i32
    return %arg0, %c0_i32, %c0_i32_0 : i32, i32, i32
  }
  func.func @transform_1(%arg0: i32) -> (i32, i32, i32) {
    %c0_i32 = arith.constant 0 : i32
    %c0_i32_0 = arith.constant 0 : i32
    %c0_i32_1 = arith.constant 0 : i32
    return %arg0, %c0_i32, %c0_i32_0 : i32, i32, i32
  }
  func.func @transform_2(%arg0: i32) -> (i32, i32) {
    %c0_i32 = arith.constant 0 : i32
    %c0_i32_0 = arith.constant 0 : i32
    %c0_i32_1 = arith.constant 0 : i32
    return %c0_i32, %c0_i32_0 : i32, i32
  }
  func.func @transform_3(%arg0: i32) -> (i32, i32) {
    %c0_i32 = arith.constant 0 : i32
    %c0_i32_0 = arith.constant 0 : i32
    %c0_i32_1 = arith.constant 0 : i32
    return %c0_i32, %c0_i32_0 : i32, i32
  }
  func.func @transform_4(%arg0: i32) -> (i32, i32, i32) {
    %c0_i32 = arith.constant 0 : i32
    %c0_i32_0 = arith.constant 0 : i32
    %c0_i32_1 = arith.constant 0 : i32
    return %arg0, %c0_i32, %c0_i32_0 : i32, i32, i32
  }
  func.func @transform_5(%arg0: i32) -> (i32, i32) {
    %c0_i32 = arith.constant 0 : i32
    %c0_i32_0 = arith.constant 0 : i32
    %c0_i32_1 = arith.constant 0 : i32
    return %c0_i32, %c0_i32_0 : i32, i32
  }
  func.func @transform_6(%arg0: i32) -> (i32, i32) {
    %c0_i32 = arith.constant 0 : i32
    %c0_i32_0 = arith.constant 0 : i32
    %c0_i32_1 = arith.constant 0 : i32
    return %c0_i32, %c0_i32_0 : i32, i32
  }
}

</mosaic_0001>

<bundles_post_ra>
// kernel: tpu_custom_call.1
= control target key start
LH: loop header
LB: loop body
LE: loop exit
PB: predicated region body
PF: predicated region fallthrough
CT: control target
= control target key end

     0   :  { %12 = vsyncpa [#allocation3], 0  ;;  %s1018_s0 = inlined_call_operand.hbm [shape: f32[2,8,128], index: 0, kind: input, shape index: {}]   ;;  %s1019_s1 = inlined_call_operand.hbm [shape: u32[2,8,128], index: 1, kind: input, shape index: {}]   ;;  %s1020_s2 = inlined_call_operand.vmem [shape: bf16[8,24], index: 2, kind: input, shape index: {}]   ;;  %s1021_s3 = inlined_call_operand.vmem [shape: f32[8,1], index: 3, kind: input, shape index: {}]   ;;  %s1022_s4 = inlined_call_operand.hbm [shape: f32[2,8,128], index: 4, kind: output, shape index: {0}]   ;;  %s1023_s5 = inlined_call_operand.vmem [shape: f32[8,1], index: 5, kind: output, shape index: {1}]   ;;  %s1024_s6 = inlined_call_operand.vmem [shape: f32[8,1], index: 6, kind: output, shape index: {2}]  }
   0x1   :  { %14 = vsyncpa [#allocation3 + $0x1], 0 }
   0x2   :  { %15 = vsyncpa [#allocation6], 0 }
   0x3   :  { %17 = vsyncpa [#allocation6 + $0x1], 0 }
   0x4   :  { %18 = vsyncpa [#allocation4], 0 }
   0x5   :  { %20 = vsyncpa [#allocation4 + $0x1], 0  ;;  %s785_s21 = smov 0   ;;  %s787_s22 = smov 0  }
   0x6   :  { %s789_s23 = smov 0   ;;  %s791_s24 = smov 0  }
   0x7 LB: > { %s806_s25 = sadd.s32 4294967295, %s738_s24   ;;  %s516_s26 = sadd.s32 4294967294, %s738_s24   ;;  %s738_s24 = sphi %s791_s24, %s1043_s24   ;;  %s734_s23 = sphi %s789_s23, %s1042_s23   ;;  %s730_s22 = sphi %s787_s22, %s1041_s22   ;;  %s726_s21 = sphi %s785_s21, %s1040_s21  }
   0x8   : > { %s810_s27 = sadd.s32 1, %s738_s24   ;;  %s33_s28 = sadd.s32 1, %s734_s23 }
   0x9   : > { %s30_s29 = ssub.s32 %s738_s24, %s810_s27  ;;  %p40_p0 = scmp.ne.s32.totalorder %s734_s23, %s730_s22 }
   0xa   : > { %p31_p1 = scmp.eq.s32.totalorder %s30_s29, 0  ;;  %p41_p2 = scmp.eq.s32.totalorder %s738_s24, 0 }
   0xb   : > { %p46_p3 = scmp.ne.s32.totalorder %s730_s22, %s726_s21  ;;  %p47_p4 = scmp.eq.s32.totalorder %s806_s25, 0 }
   0xc   : > { %s822_s30 = scalar_select %p31_p1, %s734_s23, %s33_s28  }
   0xd   : > { %p824_p5 = por %p41_p2, %p40_p0  ;;  %p828_p6 = por %p47_p4, %p46_p3 }
   0xe   : > { %p138_p7 = scmp.eq.s32.totalorder %s806_s25, 1  ;;  %p144_p8 = scmp.eq.s32.totalorder %s516_s26, 1 }
   0xf   : > { %s1028_s8 = scalar_select %p828_p6, 1, 0 }
  0x10   : > { %p565_p10 = scmp.lt.s32.totalorder %s738_s24, 2  ;;  %p835_p11 = por %p138_p7, %p40_p0 }
  0x11   : > { %p839_p12 = por %p144_p8, %p46_p3  ;;  %s844_s11 = sand.u32 1, %s734_s23  }
  0x12   : > { %s1029_s9 = scalar_select %p835_p11, 1, 0 }
  0x13   : > { %s1030_s10 = scalar_select %p839_p12, 1, 0 }
  0x14   : > { %s520_s12 = sshll.u32 %s738_s24, 7  ;;  %s519_s13 = sshll.u32 %s844_s11, 3 }
  0x15   : > { %s853_s16 = scalar_lea.hbm %s1018_s0, %s520_s12  ;;  %s216_s17 = scalar_lea.vmem [#allocation2], %s519_s13 }
  0x16   : > { %s223_s18 = sshll.u32 %s216_s17, 4  ;;  %p859_p13 = pnand %p565_p10, %p824_p5  ;;  %s863_s18 = int_to_ptr.vmem [resolvable:$true] %s223_s18 }
  0x17   : > { %s213_s20 = scalar_lea.sflag [#allocation3], %s844_s11  ;;  %s608_s26 = scalar_lea.hbm %s853_s16, 128 }
  0x18   : > { %p609_p2 = scmp.ne.s32.totalorder %s853_s16, %s608_s26  ;;  %p610_p3 = pneg %p859_p13 }
  0x19   : > { %s613_s7 = scalar_lea.hbm %s1018_s0, 256  ;;  %p614_p5 = scmp.lt.u32.totalorder %s853_s16, %s1018_s0 }
  0x1a   : > { %p611_p4 = pnand %p610_p3, %p609_p2  ;;  %p615_p8 = scmp.lt.u32.totalorder %s613_s7, %s608_s26 }
  0x1b   : > { %p617_p9 = scmp.lt.u32.totalorder %s608_s26, %s853_s16 }
  0x1c   : > { %p612_p7 = pneg %p611_p4  ;;  %p616_p10 = por %p615_p8, %p614_p5 }
  0x1e   : > { %p618_p0 = por %p617_p9, %p616_p10 }
  0x20   : > { %p619_p1 = pnand %p618_p0, %p612_p7 }
  0x22   : > { %622 = shalt.err (!%p619_p1)
}
  0x23   : > { %s623_s17 = scalar_lea.vmem %s863_s18, 128  ;;  %s740_s28 = smov [#allocation2]  }
  0x24   : > { %p624_p2 = scmp.ne.s32.totalorder %s863_s18, %s623_s17  ;;  %s628_s29 = sshll.u32 %s740_s28, 4  ;;  %s629_s29 = int_to_ptr.vmem [resolvable:$false] %s628_s29 }
  0x25   : > { %s630_s14 = scalar_lea.vmem %s629_s29, 256  ;;  %p631_p11 = scmp.lt.s32.totalorder %s863_s18, %s629_s29 }
  0x26   : > { %p626_p4 = pnand %p624_p2, %p610_p3  ;;  %p632_p5 = scmp.lt.s32.totalorder %s630_s14, %s623_s17 }
  0x28   : > { %p627_p12 = pneg %p626_p4  ;;  %p633_p8 = por %p632_p5, %p631_p11 }
  0x2a   : > { %p634_p9 = pnand %p633_p8, %p627_p12 }
  0x2c   : > { %637 = shalt.err (!%p634_p9)
}
  0x2d   : > { %557 = dma.hbm_to_vmem [thread:$0]  (!%p859_p13), %s853_s16, 128, %s863_s18, %s213_s20  }
  0x2e   : > { %p1032_p0 = scmp.lt.s32.totalorder %s738_s24, 3  ;;  %p1033_p1 = scmp.ge.s32.totalorder %s738_s24, 1 }
  0x2f   : > { %s906_s17 = scalar_lea.hbm %s1019_s1, %s520_s12  ;;  %s234_s28 = scalar_lea.vmem [#allocation5], %s519_s13 }
  0x30   : > { %p897_p7 = pnand %p1033_p1, %p1032_p0  ;;  %s241_s29 = sshll.u32 %s234_s28, 4  ;;  %s242_s29 = int_to_ptr.vmem [resolvable:$true] %s241_s29 }
  0x31   : > { %s231_s16 = scalar_lea.sflag [#allocation6], %s844_s11  ;;  %s638_s18 = scalar_lea.hbm %s906_s17, 128 }
  0x32   : > { %s1034_s26 = scalar_select %p897_p7, 1, 0 }
  0x33   : > { %p639_p11 = scmp.ne.s32.totalorder %s906_s17, %s638_s18  ;;  %s643_s12 = scalar_lea.hbm %s1019_s1, 256 }
  0x34   : > { %p644_p2 = scmp.lt.u32.totalorder %s906_s17, %s1019_s1  ;;  %p645_p4 = scmp.lt.u32.totalorder %s643_s12, %s638_s18 }
  0x35   : > { %p641_p12 = pnand %p639_p11, %p610_p3  ;;  %p647_p8 = scmp.lt.u32.totalorder %s638_s18, %s906_s17 }
  0x36   : > { %p646_p5 = por %p645_p4, %p644_p2 }
  0x37   : > { %p642_p10 = pneg %p641_p12 }
  0x38   : > { %p648_p9 = por %p647_p8, %p646_p5 }
  0x3a   : > { %p649_p0 = pnand %p648_p9, %p642_p10 }
  0x3c   : > { %652 = shalt.err (!%p649_p0)
}
  0x3d   : > { %s653_s11 = scalar_lea.vmem %s242_s29, 128  ;;  %s741_s13 = smov [#allocation5]  }
  0x3e   : > { %p654_p1 = scmp.ne.s32.totalorder %s242_s29, %s653_s11  ;;  %s658_s28 = sshll.u32 %s741_s13, 4  ;;  %s659_s28 = int_to_ptr.vmem [resolvable:$false] %s658_s28 }
  0x3f   : > { %s660_s20 = scalar_lea.vmem %s659_s28, 256  ;;  %p661_p6 = scmp.lt.s32.totalorder %s242_s29, %s659_s28 }
  0x40   : > { %p656_p11 = pnand %p654_p1, %p610_p3  ;;  %p662_p7 = scmp.lt.s32.totalorder %s660_s20, %s653_s11 }
  0x42   : > { %p657_p12 = pneg %p656_p11  ;;  %p663_p2 = por %p662_p7, %p661_p6 }
  0x44   : > { %p664_p4 = pnand %p663_p2, %p657_p12 }
  0x46   : > { %667 = shalt.err (!%p664_p4)
}
  0x47   : > { %560 = dma.hbm_to_vmem [thread:$0]  (!%p859_p13), %s906_s17, 128, %s242_s29, %s231_s16  }
  0x48   : > { %p1035_p10 = scmp.ne.s32.totalorder %s1034_s26, 0 }
  0x49   : > { %s933_s18 = sand.u32 (!%p1035_p10), 1, %s730_s22   ;;  %p1036_p6 = scmp.ne.s32.totalorder (!%p1035_p10), %s1028_s8, 0 }
  0x4a   : > { %250 = sbr.rel (%p1035_p10) target bundleno = 584 (0x248), region = 36  ;;  %s936_s14 = sshll.u32 (!%p1035_p10), %s933_s18, 3 }
  0x4b   : > { %s253_s12 = scalar_lea.sflag (!%p1035_p10), [#allocation3], %s933_s18  ;;  %s256_s7 = scalar_lea.vmem (!%p1035_p10), [#allocation2], %s936_s14 }
  0x51   : > { %713 = dma.done.wait (%p1036_p6), %s253_s12, 128  }
  0x52   : > { %715 = vsyncadd (%p1036_p6), %s253_s12, 4294967168  ;;  %s262_s19 = scalar_lea.sflag [#allocation6], %s933_s18  ;;  %s265_s26 = scalar_lea.vmem [#allocation5], %s936_s14 }
  0x53   : > { %717 = dma.done.wait (%p1036_p6), %s262_s19, 128  }
  0x54   : > { %719 = vsyncadd (%p1036_p6), %s262_s19, 4294967168  ;;  %v742_v0 = vmov 0.0   ;;  %v300_v1 = vld [vmem:[%s265_s26] sm:$0xff]  ;;  %v303_v2 = vld [vmem:[%s256_s7] sm:$0xff]  ;;  %vm743_vm1 = vmmov 0   ;;  %v744_v6 = vmov 0  }
  0x55   : > { %540 = vmatprep.subr.bf16.mxu0 %v742_v0  ;;  %vm301_vm0 = vcmp.ge.u32.totalorder %v300_v1, 429496730  ;;  %544 = vmatprep.mubr.msk.bf16.mxu0 %vm743_vm1, %v742_v0  ;;  %v319_v5 = vld [vmem:[%s1021_s3] sm:$0xff]  ;;  %s745_s16 = smov 2   ;;  %s746_s8 = smov 126   ;;  %vm309_vm2 = vcmask 15360  }
  0x56   : > { %v302_v3 = vsel %vm301_vm0, 1.1111112, %v742_v0  ;;  %606 = vset.pattern.permute.xlu1 %v744_v6  ;;  %607 = vset.pattern.permute.xlu0 %v744_v6  ;;  %vm527_vm3 = vmneg %vm309_vm2  ;;  %vm747_vm4 = vmmov 1   ;;  %vm314_vm6 = vcmask 1031168   ;;  %vm329_vm7 = vcmask 1043456   ;;  %s294_s13 = scalar_lea.vmem [#allocation7], %s936_s14 }
  0x57   : > { %v304_v4 = vmul.f32 %v303_v2, %v302_v3  ;;  %322 = vperm.xlu1 %606, %v319_v5   ;;  %vm528_vm5 = vmpackc.low %vm747_vm4, %vm527_vm3  ;;  %v316_v13 = vld [vmem:[%s1020_s2] sm:$0xf]  ;;  %vm325_vm8 = vcmask 195584   ;;  %p532_p13 = scmp.ne.s32.totalorder %s806_s25, 0 }
  0x58   : > { %vm382_vm10 = vcmask (!%p532_p13), 7168   ;;  %v748_v23 = vmov (!%p532_p13), 0.0  }
  0x59   : > { %306 = vrot.lane.b32.xlu0 %v304_v4, %s745_s16  ;;  %383 = vst.msk [vmem:[%s1023_s5] sm:$0xff] (!%p532_p13), %vm382_vm10, %v748_v23  ;;  %384 = vst.msk [vmem:[%s1024_s6] sm:$0xff] (!%p532_p13), %vm382_vm10, %v748_v23 }
  0x5d   : > { %311 = vrot.lane.b32.xlu0 %v304_v4, %s746_s8 }
  0xcb   : > { %v307_v7 = vpop.permute.xlu0 %306 }
  0xcc   : > { %v529_v8 = vpack.c.bf16 %v304_v4, %v307_v7 }
  0xce   : > { %541 = vmatpush3.bf16.msk.msra.mxu0 %vm528_vm5, %v529_v8 }
  0xcf   : > { %v312_v9 = vpop.permute.xlu0 %311  ;;  %542 = vmatprep.subr.bf16.mxu0 %v742_v0 }
  0xd0   : > { %v315_v10 = vsel %vm314_vm6, %v312_v9, 0.0 }
  0xd1   : > { %v318_v11 = vpack.c.bf16 %v315_v10, %v315_v10 }
  0xd3   : > { %v331_v12 = vsel %vm329_vm7, %v318_v11, 0 }
  0xd4   : > { %543 = vmatpush3.bf16.msra.mxu0 %v331_v12 }
  0xd6   : > { %v323_v14 = vpop.permute.xlu1 %322 }
  0xd7   : > { %545 = vmatmul.mubr.msk.bf16.vlgmr.msra.gmra.mrb[0].mxu0 %vm325_vm8, %v316_v13 }
 0x1aa   : > { %v367_v15 = vpop.f32.mrb[0].mxu0 }
 0x1ab   : > { %v368_v16 = vadd.f32 %v367_v15, %v323_v14  ;;  %v546_v17 = vpop.f32.mrb[1].mxu0 }
 0x1ac   : > { %v370_v18 = vpop.f32.mrb[2].mxu0  ;;  %381 = sbr.rel (%p532_p13) target bundleno = 435 (0x1b3), region = 48 }
 0x1ad   : > { %v373_v19 = vadd.f32 %v368_v16, %v304_v4  ;;  %v547_v20 = vpop.f32.mrb[3].mxu0 }
 0x1af   : > { %vm374_vm9 = vcmp.ge.f32.partialorder %v373_v19, 0.0  ;;  %v375_v21 = vmul.f32 0.2, %v373_v19 }
 0x1b1   : > { %v376_v22 = vsel %vm374_vm9, %v373_v19, %v375_v21 }
 0x1b2   : > { %377 = vst [vmem:[%s294_s13] sm:$0xff] %v376_v22 }
 0x1b3 PF: > { %386 = vadd.xlane.f32.xlu0 %v376_v22  ;;  %v392_v24 = vmul.f32 %v376_v22, %v376_v22  ;;  %s534_s14 = sshll.u32 %s806_s25, 7  ;;  %s411_s19 = sshll.u32 %s294_s13, 4  ;;  %s412_s19 = int_to_ptr.vmem [resolvable:$true] %s411_s19 }
 0x1b4   : > { %s968_s29 = scalar_lea.hbm %s1022_s4, %s534_s14  ;;  %s398_s16 = scalar_lea.sflag [#allocation4], %s933_s18 }
 0x1b5   : > { %s668_s8 = scalar_lea.vmem %s412_s19, 128  ;;  %p1037_p7 = scmp.ne.s32.totalorder %s1029_s9, 0 }
 0x1b6   : > { %p669_p3 = scmp.ne.s32.totalorder %s412_s19, %s668_s8  ;;  %s749_s15 = smov [#allocation7]  }
 0x1b7   : > { %393 = vadd.xlane.f32.xlu0 %v392_v24  ;;  %s672_s11 = sshll.u32 %s749_s15, 4  ;;  %s673_s11 = int_to_ptr.vmem [resolvable:$false] %s672_s11 }
 0x1b8   : > { %p670_p5 = pnand %p669_p3, %p1037_p7  ;;  %s674_s28 = scalar_lea.vmem %s673_s11, 256 }
 0x1b9   : > { %p675_p9 = scmp.lt.s32.totalorder %s412_s19, %s673_s11  ;;  %p676_p0 = scmp.lt.s32.totalorder %s674_s28, %s668_s8 }
 0x1ba   : > { %p671_p8 = pneg %p670_p5 }
 0x1bb   : > { %p677_p1 = por %p676_p0, %p675_p9 }
 0x1bd   : > { %p678_p11 = pnand %p677_p1, %p671_p8 }
 0x1bf   : > { %681 = shalt.err (!%p678_p11)
}
 0x1c0   : > { %s682_s25 = scalar_lea.hbm %s968_s29, 128  ;;  %s686_s20 = scalar_lea.hbm %s1022_s4, 256 }
 0x1c1   : > { %p683_p12 = scmp.ne.s32.totalorder %s968_s29, %s682_s25  ;;  %p687_p10 = scmp.lt.u32.totalorder %s968_s29, %s1022_s4 }
 0x1c2   : > { %p688_p6 = scmp.lt.u32.totalorder %s686_s20, %s682_s25  ;;  %p690_p3 = scmp.lt.u32.totalorder %s682_s25, %s968_s29 }
 0x1c3   : > { %p684_p2 = pnand %p683_p12, %p1037_p7 }
 0x1c4   : > { %p689_p13 = por %p688_p6, %p687_p10 }
 0x1c5   : > { %p685_p4 = pneg %p684_p2 }
 0x1c6   : > { %p691_p5 = por %p690_p3, %p689_p13 }
 0x1c8   : > { %p692_p8 = pnand %p691_p5, %p685_p4 }
 0x1ca   : > { %695 = shalt.err (!%p692_p8)
}
 0x1cb   : > { %552 = dma.vmem_to_hbm [thread:$0]  (%p1037_p7), %s412_s19, 128, %s968_s29, %s398_s16   ;;  %v385_v25 = vld [vmem:[%s1023_s5] sm:$0xff]  ;;  %vm389_vm11 = vcmask 7168  }
 0x1cc   : > { %v391_v28 = vld [vmem:[%s1024_s6] sm:$0xff] }
 0x240   : > { %v387_v26 = vpop.xlane.xlu0 %386 }
 0x241   : > { %v388_v27 = vadd.f32 %v387_v26, %v385_v25 }
 0x243   : > { %390 = vst.msk [vmem:[%s1023_s5] sm:$0xff] %vm389_vm11, %v388_v27 }
 0x244   : > { %v394_v29 = vpop.xlane.xlu0 %393 }
 0x245   : > { %v395_v30 = vadd.f32 %v394_v29, %v391_v28 }
 0x247   : > { %396 = vst.msk [vmem:[%s1024_s6] sm:$0xff] %vm389_vm11, %v395_v30 }
 0x248 PF: > { %s435_s19 = sand.u32 1, %s726_s21   ;;  %p1038_p7 = scmp.ne.s32.totalorder %s1030_s10, 0 }
 0x249   : > { %p1039_p9 = scmp.ge.s32.totalorder %s738_s24, 2  ;;  %s436_s29 = scalar_lea.sflag [#allocation4], %s435_s19 }
 0x24b   : > { %p562_p0 = pnand %p1039_p9, %p1038_p7 }
 0x24d   : > { %721 = dma.done.wait (!%p562_p0), %s436_s29, 128  }
 0x24e   : > { %723 = vsyncadd (!%p562_p0), %s436_s29, 4294967168  ;;  %p23_p1 = scmp.ge.s32.totalorder %s810_s27, 4   ;;  %s1040_s21 = smov %s730_s22 }
 0x24f   : > { %s1041_s22 = smov %s734_s23  ;;  %s1042_s23 = smov %s822_s30 }
 0x250   : > { %s1043_s24 = smov %s810_s27  ;;  %25 = sbr.rel (!%p23_p1) target bundleno = 7 (0x7), region = 114 }
 0x257   :  { %441 = vsyncpa [#allocation3], 1 }
 0x258   :  { %443 = vsyncpa [#allocation3 + $0x1], 1 }
 0x259   :  { %444 = vsyncpa [#allocation6], 1 }
 0x25a   :  { %446 = vsyncpa [#allocation6 + $0x1], 1 }
 0x25b   :  { %447 = vsyncpa [#allocation4], 1 }
 0x25c   :  { %449 = vsyncpa [#allocation4 + $0x1], 1 }

</bundles_post_ra>
